<compile_context>
chip_gen: v5e
topology: v5e:2x2
jax: 0.10.0
libtpu: 0.0.40
codegen_flags: <defaults>
</compile_context>

<pallas_src>
import functools

import jax
import jax.numpy as jnp
from jax.experimental import pallas as pl
from jax.experimental.pallas import tpu as pltpu


def _round_up(x: int, m: int) -> int:
    return (x + m - 1) // m * m


def _pick_tile(dim_padded: int, pref: int) -> int:
    """Largest multiple of 128 <= pref that divides dim_padded (a 128-multiple)."""
    t = min(pref, dim_padded)
    while dim_padded % t != 0:
        t -= 128
    return t


# ----------------------------------------------------------------------------
# One-time parameter preparation (do this at weight-load time, not per call).
# ----------------------------------------------------------------------------
def prepare_linear_params(w, b, use_bf16=True):
    """W (OUT, IN) -> (IN, OUT) [optionally bf16], b (OUT,) -> (1, OUT) f32."""
    w_t = w.T                                   # (IN, OUT): K-major LHS, N on lanes
    if use_bf16:
        w_t = w_t.astype(jnp.bfloat16)          # halve HBM weight bytes; f32 accum stays
    b2 = b.reshape(1, -1).astype(jnp.float32)
    return w_t, b2


# ----------------------------------------------------------------------------
# Kernels
# ----------------------------------------------------------------------------
def _small_linear_kernel(x_ref, w_ref, b_ref, o_ref):
    """Whole problem in one block: o = x @ w + b (w already (IN, OUT))."""
    x = x_ref[...].astype(w_ref.dtype)          # bf16 MXU feed when weights are bf16
    acc = jnp.dot(x, w_ref[...], preferred_element_type=jnp.float32)
    o_ref[...] = (acc + b_ref[...]).astype(o_ref.dtype)


def _tiled_linear_kernel(x_ref, w_ref, b_ref, o_ref):
    """K-tiled: accumulate directly into the f32 output tile (VMEM-resident over k).

    x_ref: (tm, tk)  w_ref: (tk, tn)  b_ref: (1, tn)  o_ref: (tm, tn) f32
    """
    k = pl.program_id(2)

    @pl.when(k == 0)
    def _():
        o_ref[...] = jnp.zeros_like(o_ref)

    x = x_ref[...].astype(w_ref.dtype)          # only the small activation tile is cast
    o_ref[...] += jnp.dot(x, w_ref[...], preferred_element_type=jnp.float32)

    @pl.when(k == pl.num_programs(2) - 1)
    def _():
        o_ref[...] += b_ref[...]                # bias epilogue on the VPU


# ----------------------------------------------------------------------------
# Forward wrapper
# ----------------------------------------------------------------------------
@jax.jit
def linear_pallas(x, w_t, b2):
    """y = x @ w_t + b2  (== torch Linear: x @ W.T + b, with W prepared as w_t=W.T).

    x: (B, IN) f32, w_t: (IN, OUT) f32 or bf16, b2: (1, OUT) f32.
    """
    B, IN = x.shape
    IN_w, OUT = w_t.shape
    assert IN_w == IN and b2.shape == (1, OUT)

    x_bytes = jnp.dtype(x.dtype).itemsize
    w_bytes = jnp.dtype(w_t.dtype).itemsize
    out_dtype = jnp.float32

    # ---- small-problem fast path: one block == full arrays, no padding -------
    total_bytes = B * IN * x_bytes + IN * OUT * w_bytes + OUT * 4 + B * OUT * 4
    if total_bytes <= 8 * 1024 * 1024:
        return pl.pallas_call(
            _small_linear_kernel,
            out_shape=jax.ShapeDtypeStruct((B, OUT), out_dtype),
        )(x, w_t, b2)

    # ---- tiled path for large layers -----------------------------------------
    INp = _round_up(IN, 128)
    OUTp = _round_up(OUT, 128)
    tm = min(256, _round_up(B, 16))             # 16: bf16 sublane packing (v5e)
    tk = _pick_tile(INp, 1024)                  # bf16 weights leave room for tk=1024
    tn = _pick_tile(OUTp, 256)                  # keep >=2 OUT tiles on wide layers
    Bp = _round_up(B, tm)

    # Pad only when needed (no-ops are skipped entirely).  For a production
    # module, fold the weight/bias padding into prepare_linear_params.
    if (Bp, INp) != (B, IN):
        x = jnp.pad(x, ((0, Bp - B), (0, INp - IN)))
    if w_t.shape != (INp, OUTp):
        w_t = jnp.pad(w_t, ((0, INp - IN), (0, OUTp - OUT)))
    if b2.shape[1] != OUTp:
        b2 = jnp.pad(b2, ((0, 0), (0, OUTp - OUT)))

    grid = (Bp // tm, OUTp // tn, INp // tk)

    # VMEM budget from actual dtypes: double-buffered x/w/bias tiles + f32 out tile.
    vmem_est = (2 * (tm * tk * x_bytes + tk * tn * w_bytes + tn * 4)
                + 2 * tm * tn * 4)
    vmem_limit = int(min(max(2 * vmem_est, 16 * 1024 * 1024), 48 * 1024 * 1024))

    out = pl.pallas_call(
        _tiled_linear_kernel,
        out_shape=jax.ShapeDtypeStruct((Bp, OUTp), out_dtype),
        grid=grid,
        in_specs=[
            pl.BlockSpec((tm, tk), lambda i, j, k: (i, k)),   # x tile
            pl.BlockSpec((tk, tn), lambda i, j, k: (k, j)),   # W tile, (K, N) layout
            pl.BlockSpec((1, tn), lambda i, j, k: (0, j)),    # bias row
        ],
        out_specs=pl.BlockSpec((tm, tn), lambda i, j, k: (i, j)),
        compiler_params=pltpu.CompilerParams(
            dimension_semantics=("parallel", "parallel", "arbitrary"),
            vmem_limit_bytes=vmem_limit),
    )(x, w_t, b2)

    if (Bp, OUTp) != (B, OUT):
        out = out[:B, :OUT]
    return out


if __name__ == "__main__":
    # Net(__init__) hyperparameters — only input_dim/output_dim affect forward.
    input_dim = 32
    output_dim = 16
    hidden_dim = 64      # unused by Net.forward
    embedding_dim = 8    # unused by Net.forward
    n_layers = 2         # unused by Net.forward
    drop_prob = 0.1      # unused by Net.forward
    batch = 8

    key = jax.random.PRNGKey(0)
    kx, kw, kb, kx2, kw2, kb2 = jax.random.split(key, 6)

    x = jax.random.normal(kx, (batch, input_dim), dtype=jnp.float32)
    # nn.Linear parameter shapes: W (out, in), b (out,)
    w = jax.random.normal(kw, (output_dim, input_dim), dtype=jnp.float32) * 0.1
    b = jax.random.normal(kb, (output_dim,), dtype=jnp.float32) * 0.1

    y_ref = x @ w.T + b

    # Default fast path: bf16 weights prepared once, f32 accumulation.
    w_bf16, b_row = prepare_linear_params(w, b, use_bf16=True)
    y = linear_pallas(x, w_bf16, b_row)
    jax.block_until_ready(y)
    assert y.shape == y_ref.shape
    assert jnp.allclose(y, y_ref, atol=2e-2, rtol=2e-2), "bf16 path mismatch vs reference"

    # Full-f32 path: verifies the single-block path at tight tolerance.
    w_f32, b_row32 = prepare_linear_params(w, b, use_bf16=False)
    y32 = linear_pallas(x, w_f32, b_row32)
    jax.block_until_ready(y32)
    assert jnp.allclose(y32, y_ref, atol=1e-5, rtol=1e-5), "f32 path mismatch vs reference"

    # Larger layer exercising the K-tiled accumulate-into-output path.
    Bl, INl, OUTl = 512, 2048, 1024
    xl = jax.random.normal(kx2, (Bl, INl), dtype=jnp.float32)
    wl = jax.random.normal(kw2, (OUTl, INl), dtype=jnp.float32) * 0.05
    bl = jax.random.normal(kb2, (OUTl,), dtype=jnp.float32) * 0.1
    yl_ref = xl @ wl.T + bl

    wl_bf16, bl_row = prepare_linear_params(wl, bl, use_bf16=True)
    yl = linear_pallas(xl, wl_bf16, bl_row)
    jax.block_until_ready(yl)
    assert yl.shape == yl_ref.shape
    assert jnp.allclose(yl, yl_ref, atol=8e-2, rtol=2e-2), "tiled bf16 path mismatch"

    print("KERNEL_OK")
</pallas_src>

<mosaic_0001>
module attributes {stable_mosaic.version = 11 : i64} {
  func.func @_small_linear_kernel(%arg0: memref<8x32xf32, #tpu.memory_space<vmem>>, %arg1: memref<32x16xbf16, #tpu.memory_space<vmem>>, %arg2: memref<1x16xf32, #tpu.memory_space<vmem>>, %arg3: memref<8x16xf32, #tpu.memory_space<vmem>>) attributes {dimension_semantics = [], scalar_prefetch = 0 : i64, scratch_operands = 0 : i64, tpu.core_type = #tpu.core_type<tc>} {
    %c0 = arith.constant 0 : index
    %c0_0 = arith.constant 0 : index
    %0 = vector.load %arg0[%c0, %c0_0] : memref<8x32xf32, #tpu.memory_space<vmem>>, vector<8x32xf32>
    %1 = arith.truncf %0 : vector<8x32xf32> to vector<8x32xbf16>
    %c0_1 = arith.constant 0 : index
    %c0_2 = arith.constant 0 : index
    %2 = vector.load %arg1[%c0_1, %c0_2] : memref<32x16xbf16, #tpu.memory_space<vmem>>, vector<32x16xbf16>
    %cst = arith.constant dense<0.000000e+00> : vector<8x16xf32>
    %3 = tpu.matmul %1, %2, %cst {dimension_numbers = #tpu.dot_dimension_numbers<[1], [0], [0], [1], [0, 0, 1, 1], [], []>} : vector<8x32xbf16>, vector<32x16xbf16>, vector<8x16xf32> -> vector<8x16xf32>
    %c0_3 = arith.constant 0 : index
    %c0_4 = arith.constant 0 : index
    %4 = vector.load %arg2[%c0_3, %c0_4] : memref<1x16xf32, #tpu.memory_space<vmem>>, vector<1x16xf32>
    %5 = vector.broadcast %4 : vector<1x16xf32> to vector<8x16xf32>
    %6 = arith.addf %3, %5 : vector<8x16xf32>
    %c0_5 = arith.constant 0 : index
    %c0_6 = arith.constant 0 : index
    %7 = vector.load %arg3[%c0_5, %c0_6] : memref<8x16xf32, #tpu.memory_space<vmem>>, vector<8x16xf32>
    tpu.vector_store %arg3[%c0_5, %c0_6], %6 {strides = array<i32>} : memref<8x16xf32, #tpu.memory_space<vmem>>, vector<8x16xf32>,
    return
  }
}

</mosaic_0001>

<bundles_post_ra>
// kernel: linear_pallas.1
= control target key start
LH: loop header
LB: loop body
LE: loop exit
PB: predicated region body
PF: predicated region fallthrough
CT: control target
= control target key end

     0   :  { %s148_s0 = inlined_call_operand.vmem [shape: f32[8,32], index: 0, kind: input, shape index: {}]   ;;  %s149_s1 = inlined_call_operand.vmem [shape: bf16[32,16], index: 1, kind: input, shape index: {}]   ;;  %s150_s2 = inlined_call_operand.vmem [shape: f32[1,16], index: 2, kind: input, shape index: {}]   ;;  %s151_s3 = inlined_call_operand.hbm [shape: f32[8,16], index: 3, kind: output, shape index: {}]  }
   0x1   :  { %v83_v0 = vld [vmem:[%s149_s1 + $0x8] sm:$0xff] }
   0x2   :  { %8 = vsyncpa [#allocation3], 0  ;;  %48 = vmatpush.bf16.msra.mxu0 %v83_v0  ;;  %v82_v1 = vld [vmem:[%s149_s1] sm:$0xff]  ;;  %vm38_vm0 = vcmask 261120   ;;  %s112_s20 = smov [#allocation2]   ;;  %s64_s24 = sshll.u32 %s151_s3, 4  ;;  %s65_s24 = int_to_ptr.hbm [resolvable:$true] %s64_s24 }
   0x3   :  { %v16_v2 = vld [vmem:[%s148_s0] sm:$0xff]  ;;  %s62_s21 = sshll.u32 %s112_s20, 4  ;;  %vm55_vm1 = vcmask 130048   ;;  %s63_s21 = int_to_ptr.vmem [resolvable:$true] %s62_s21 }
   0x4   :  { %v17_v3 = vpack.c.bf16 %v16_v2, %v16_v2  ;;  %v85_v4 = vld [vmem:[%s150_s2] ss:$0 sm:$0xff] }
   0x6   :  { %49 = vmatpush.bf16.msra.mxu0 %v82_v1 }
   0x9   :  { %81 = vmatmul.msk.bf16.vlgmr.msra.gmra.mxu0 %vm38_vm0, %v17_v3 }
  0x86   :  { %v51_v5 = vpop.f32.mrf.mxu0 }
  0x87   :  { %v52_v6 = vadd.f32 %v85_v4, %v51_v5 }
  0x89   :  { %56 = vst.msk [vmem:[#allocation2] sm:$0xff] %vm55_vm1, %v52_v6 }
  0x8a   :  { %67 = dma.vmem_to_hbm [thread:$0]  %s63_s21, 128, %s65_s24, [#allocation3]  }
  0x8e   :  { %v53_v7 = vpop.f32.mrf.mxu0 }
  0x8f   :  { %110 = dma.done.wait [#allocation3], 128  }
  0x90   :  { %111 = vsyncadd [#allocation3], 4294967168 }
  0x91   :  { %72 = vsyncpa [#allocation3], 1 }

</bundles_post_ra>
